<compile_context>
chip_gen: v6e
topology: v6e:2x2x1
jax: 0.10.0
libtpu: 0.0.40
codegen_flags: <defaults>
</compile_context>

<pallas_src>
import functools

import jax
import jax.numpy as jnp
from jax.experimental import pallas as pl
from jax.experimental.pallas import tpu as pltpu

BN_EPS = 1e-5
BLOCK_DIMS = [(128, 128), (128, 64), (64, 32)]   # do NOT pad these to "fill the MXU"


# --------------------------------------------------------------------------- kernel
def _resnet_kernel(
    x_ref,
    fc1_w, fc1_b,
    b1w1, b1b1, b1w2, b1b2,
    b2w1, b2b1, b2w2, b2b2,
    b3w1, b3b1, b3w2, b3b2,
    head_w, head_b,
    out_ref,
    *, act_dtype,
):
    def linear(a, w_ref, b_ref):
        # bf16 x bf16 MXU matmul with f32 accumulation; bias add stays f32.
        return jnp.dot(a.astype(w_ref.dtype), w_ref[...],
                       preferred_element_type=jnp.float32) + b_ref[...]

    def act(v):
        # Cast to the activation carry dtype (bf16 on v6e/v7x, f32 on v5e) then ReLU.
        return jnp.maximum(v.astype(act_dtype), 0.0)

    x = x_ref[...]  # already bf16 (cast on host)

    # fc1 -> (folded bn1) -> relu.  Dropout(0.3)/Dropout(0.2) are identity in eval mode.
    # TODO(synk): training-mode dropout would need pltpu.prng_seed / prng_random_bits.
    h = act(linear(x, fc1_w, fc1_b))

    # res block 1 (128 -> 128): shapes match -> residual add with post-ReLU fc1 output.
    o = act(linear(h, b1w1, b1b1))
    o = linear(o, b1w2, b1b2).astype(act_dtype)
    h = jnp.maximum(o + h, 0.0)

    # res block 2 (128 -> 64): no residual.
    o = act(linear(h, b2w1, b2b1))
    h = act(linear(o, b2w2, b2b2))

    # res block 3 (64 -> 32): no residual.
    o = act(linear(h, b3w1, b3b1))
    h = act(linear(o, b3w2, b3b2))

    # Head (32 -> 1), computed transposed: (1,32) x (TB,32)^T -> one lane-dense (1, TB) row.
    row = jnp.einsum("ok,tk->ot", head_w[...], h.astype(head_w.dtype),
                     preferred_element_type=jnp.float32) + head_b[...]
    out_ref[...] = row.astype(out_ref.dtype)


# --------------------------------------------------------------------------- params
def make_raw_params(key, input_size):
    """Deterministic synthetic parameters matching the PyTorch module shapes.

    Linear weights are stored as (in_features, out_features), i.e. nn.Linear.weight.T.
    """
    keys = iter(jax.random.split(key, 64))

    def linear(fin, fout):
        w = jax.random.normal(next(keys), (fin, fout), jnp.float32) * 0.05
        b = jax.random.normal(next(keys), (fout,), jnp.float32) * 0.05
        return {"w": w, "b": b}

    def bn(f):
        return {
            "gamma": 1.0 + 0.1 * jax.random.normal(next(keys), (f,), jnp.float32),
            "beta": 0.1 * jax.random.normal(next(keys), (f,), jnp.float32),
            "mean": 0.1 * jax.random.normal(next(keys), (f,), jnp.float32),
            "var": jnp.abs(1.0 + 0.1 * jax.random.normal(next(keys), (f,), jnp.float32)),
        }

    raw = {"fc1": linear(input_size, 128), "bn1": bn(128), "blocks": []}
    for fin, fout in BLOCK_DIMS:
        raw["blocks"].append({
            "lin1": linear(fin, fout), "bn1": bn(fout),
            "lin2": linear(fout, fout), "bn2": bn(fout),
        })
    raw["fc_final"] = linear(32, 1)
    return raw


def _fold(lin, bn):
    """Fold eval-mode BatchNorm1d into the preceding Linear: W'=W*s, b'=b*s+t."""
    scale = bn["gamma"] / jnp.sqrt(bn["var"] + BN_EPS)
    shift = bn["beta"] - bn["mean"] * scale
    w = (lin["w"] * scale[None, :]).astype(jnp.bfloat16)
    b = (lin["b"] * scale + shift).reshape(1, -1).astype(jnp.float32)
    return w, b


def fold_params(raw):
    """Raw PyTorch-style params -> flat kernel params (BN folded, bf16 weights)."""
    params = []
    params += list(_fold(raw["fc1"], raw["bn1"]))
    for blk in raw["blocks"]:
        params += list(_fold(blk["lin1"], blk["bn1"]))
        params += list(_fold(blk["lin2"], blk["bn2"]))
    # Head (32 -> 1) stored transposed as (1, 32) so the kernel writes a lane-dense
    # (1, TB) output row (no padded (TB, 128) slab -> ~128x less HBM writeback).
    params.append(raw["fc_final"]["w"].T.reshape(1, 32).astype(jnp.bfloat16))
    params.append(raw["fc_final"]["b"].reshape(1, 1).astype(jnp.float32))
    return tuple(params)


# --------------------------------------------------------------------------- tiling / dtype
def _round_up(x, m):
    return ((x + m - 1) // m) * m


def _derive_batch_tiling(B, block_b):
    """Pick (padded_batch, batch_tile).

    - Small batches (<= 256 rows): a single full-array grid step (no 128-alignment needed).
    - Larger batches: tiles are multiples of 128 (so every (1, TB) output block is
      lane-dense) and the grid is forced to >= 2 steps so v7x's two TensorCores both
      get work under dimension_semantics=("parallel",).
    """
    bp = _round_up(max(B, 8), 8)
    if bp <= 256:
        return bp, bp
    bp = _round_up(bp, 128)
    n_steps = max(2, -(-bp // _round_up(block_b, 128)))
    tb = _round_up(-(-bp // n_steps), 128)
    return tb * n_steps, tb


def _default_act_dtype():
    """bf16 activation carry on bf16-capable VPUs (v6e/v7x); f32 on v5e and older."""
    try:
        kind = jax.devices()[0].device_kind.lower()
    except Exception:  # pragma: no cover - fall back to the conservative choice
        return jnp.float32
    if any(tag in kind for tag in ("v2", "v3", "v4", "v5 lite", "v5e")):
        return jnp.float32
    return jnp.bfloat16


# --------------------------------------------------------------------------- wrapper
@functools.partial(jax.jit, static_argnames=("block_b", "act_dtype"))
def _forward_impl(x, params, *, block_b, act_dtype):
    B, F = x.shape
    bp, tb = _derive_batch_tiling(B, block_b)

    # Cast on the host: halves x DMA bytes; the kernel dots in bf16 anyway.
    x = x.astype(jnp.bfloat16)
    if bp != B:
        # Only pay the pad copy when the batch is ragged w.r.t. the chosen tile.
        x = jnp.pad(x, ((0, bp - B), (0, 0)))

    const = lambda i: (0, 0)  # weights/biases: same block every step -> VMEM-resident
    in_specs = [pl.BlockSpec((tb, F), lambda i: (i, 0))]
    in_specs += [pl.BlockSpec(p.shape, const) for p in params]
    # One lane-dense (1, TB) f32 row per grid step (4*TB useful bytes, no amplification).
    out_spec = pl.BlockSpec((1, tb), lambda i: (0, i))

    out = pl.pallas_call(
        functools.partial(_resnet_kernel, act_dtype=act_dtype),
        out_shape=jax.ShapeDtypeStruct((1, bp), jnp.float32),
        grid=(bp // tb,),
        in_specs=in_specs,
        out_specs=out_spec,
        compiler_params=pltpu.CompilerParams(
            # Independent batch tiles -> shard grid steps across v7x's 2 TensorCores.
            dimension_semantics=("parallel",),
        ),
    )(x, *params)
    return out[0, :B].reshape(B, 1)


def resnet_regression_forward(x, params, block_b=2048, act_dtype=None):
    """Fused eval-mode forward. x: (B, input_size) f32. Returns (B, 1) f32.

    block_b: rows per grid step (default 2048).  VMEM headroom: weights are < 64 KiB bf16
    and a 2048-row tile keeps compiler temporaries to a few MiB — inside the default
    scoped VMEM on every generation (16 MiB v5e, 32 MiB v6e/v7x).  If you push block_b
    past ~8K rows (v7x has only 64 MiB physical VMEM), set
    CompilerParams(vmem_limit_bytes=...) accordingly.
    """
    if act_dtype is None:
        act_dtype = _default_act_dtype()
    return _forward_impl(x, params, block_b=block_b, act_dtype=act_dtype)


# --------------------------------------------------------------------------- references
def _reference_forward_folded(x, params, act_dtype):
    """Pure-JAX forward with the same numerics as the kernel (bf16 dots, f32 accum)."""
    (fc1_w, fc1_b, b1w1, b1b1, b1w2, b1b2,
     b2w1, b2b1, b2w2, b2b2, b3w1, b3b1, b3w2, b3b2, hw, hb) = params

    def lin(a, w, b):
        return jnp.dot(a.astype(w.dtype), w, preferred_element_type=jnp.float32) + b

    def act(v):
        return jnp.maximum(v.astype(act_dtype), 0.0)

    h = act(lin(x.astype(jnp.bfloat16), fc1_w, fc1_b))
    o = act(lin(h, b1w1, b1b1))
    o = lin(o, b1w2, b1b2).astype(act_dtype)
    h = jnp.maximum(o + h, 0.0)
    o = act(lin(h, b2w1, b2b1))
    h = act(lin(o, b2w2, b2b2))
    o = act(lin(h, b3w1, b3b1))
    h = act(lin(o, b3w2, b3b2))
    y = jnp.einsum("ok,tk->ot", hw, h.astype(hw.dtype),
                   preferred_element_type=jnp.float32) + hb
    return y.reshape(-1, 1)


def _reference_forward_raw(x, raw):
    """Full-f32 eval-mode forward with explicit BN (exact PyTorch semantics)."""
    def lin(a, p):
        return a @ p["w"] + p["b"]

    def bn(a, p):
        scale = p["gamma"] / jnp.sqrt(p["var"] + BN_EPS)
        return (a - p["mean"]) * scale + p["beta"]

    out = jnp.maximum(bn(lin(x, raw["fc1"]), raw["bn1"]), 0.0)  # dropout = identity
    identity = out
    for blk in raw["blocks"]:
        o = jnp.maximum(bn(lin(out, blk["lin1"]), blk["bn1"]), 0.0)
        o = bn(lin(o, blk["lin2"]), blk["bn2"])
        if o.shape == identity.shape:
            o = o + identity
        identity = o
        out = jnp.maximum(o, 0.0)
    return lin(out, raw["fc_final"])


# --------------------------------------------------------------------------- main
if __name__ == "__main__":
    INPUT_SIZE = 32

    key = jax.random.PRNGKey(0)
    kx, kp = jax.random.split(key)

    raw = make_raw_params(kp, INPUT_SIZE)
    params = fold_params(raw)
    act_dtype = _default_act_dtype()

    # (B=384, block_b=128): 3-step pipelined grid (multi-tile path, exercises "parallel").
    # (B=300, block_b=128): ragged batch -> padded multi-tile path.
    # (B=16,  block_b=2048): small batch -> single full-array grid step.
    for B, block_b in ((384, 128), (300, 128), (16, 2048)):
        x = jax.random.normal(jax.random.fold_in(kx, B), (B, INPUT_SIZE), jnp.float32)

        y = resnet_regression_forward(x, params, block_b=block_b, act_dtype=act_dtype)
        y = jax.block_until_ready(y)
        assert y.shape == (B, 1)

        # Tight check vs. a pure-JAX version with identical (bf16-dot/act) numerics.
        y_folded = _reference_forward_folded(x, params, act_dtype)
        assert jnp.allclose(y, y_folded, atol=5e-3, rtol=5e-3), \
            f"mismatch vs folded reference (B={B})"

        # Sanity check vs. the exact f32 PyTorch-semantics forward (bf16-level tolerance).
        y_raw = _reference_forward_raw(x, raw)
        assert jnp.allclose(y, y_raw, atol=8e-2, rtol=8e-2), \
            f"mismatch vs raw f32 reference (B={B})"

    print("KERNEL_OK")
</pallas_src>

<mosaic_0001>
module attributes {stable_mosaic.version = 11 : i64} {
  func.func @_resnet_kernel(%arg0: i32, %arg1: memref<128x32xbf16, #tpu.memory_space<vmem>>, %arg2: memref<32x128xbf16, #tpu.memory_space<vmem>>, %arg3: memref<1x128xf32, #tpu.memory_space<vmem>>, %arg4: memref<128x128xbf16, #tpu.memory_space<vmem>>, %arg5: memref<1x128xf32, #tpu.memory_space<vmem>>, %arg6: memref<128x128xbf16, #tpu.memory_space<vmem>>, %arg7: memref<1x128xf32, #tpu.memory_space<vmem>>, %arg8: memref<128x64xbf16, #tpu.memory_space<vmem>>, %arg9: memref<1x64xf32, #tpu.memory_space<vmem>>, %arg10: memref<64x64xbf16, #tpu.memory_space<vmem>>, %arg11: memref<1x64xf32, #tpu.memory_space<vmem>>, %arg12: memref<64x32xbf16, #tpu.memory_space<vmem>>, %arg13: memref<1x32xf32, #tpu.memory_space<vmem>>, %arg14: memref<32x32xbf16, #tpu.memory_space<vmem>>, %arg15: memref<1x32xf32, #tpu.memory_space<vmem>>, %arg16: memref<1x32xbf16, #tpu.memory_space<vmem>>, %arg17: memref<1x1xf32, #tpu.memory_space<vmem>>, %arg18: memref<1x128xf32, #tpu.memory_space<vmem>>) attributes {dimension_semantics = [#tpu.dimension_semantics<parallel>], iteration_bounds = array<i64: 3>, scalar_prefetch = 0 : i64, scratch_operands = 0 : i64, tpu.core_type = #tpu.core_type<tc>, window_params = [{transform_indices = @transform_0, window_bounds = array<i64: 128, 32>}, {pipeline_mode = #tpu.pipeline_mode<synchronous>, transform_indices = @transform_1, window_bounds = array<i64: 32, 128>}, {pipeline_mode = #tpu.pipeline_mode<synchronous>, transform_indices = @transform_2, window_bounds = array<i64: 1, 128>}, {pipeline_mode = #tpu.pipeline_mode<synchronous>, transform_indices = @transform_3, window_bounds = array<i64: 128, 128>}, {pipeline_mode = #tpu.pipeline_mode<synchronous>, transform_indices = @transform_4, window_bounds = array<i64: 1, 128>}, {pipeline_mode = #tpu.pipeline_mode<synchronous>, transform_indices = @transform_5, window_bounds = array<i64: 128, 128>}, {pipeline_mode = #tpu.pipeline_mode<synchronous>, transform_indices = @transform_6, window_bounds = array<i64: 1, 128>}, {pipeline_mode = #tpu.pipeline_mode<synchronous>, transform_indices = @transform_7, window_bounds = array<i64: 128, 64>}, {pipeline_mode = #tpu.pipeline_mode<synchronous>, transform_indices = @transform_8, window_bounds = array<i64: 1, 64>}, {pipeline_mode = #tpu.pipeline_mode<synchronous>, transform_indices = @transform_9, window_bounds = array<i64: 64, 64>}, {pipeline_mode = #tpu.pipeline_mode<synchronous>, transform_indices = @transform_10, window_bounds = array<i64: 1, 64>}, {pipeline_mode = #tpu.pipeline_mode<synchronous>, transform_indices = @transform_11, window_bounds = array<i64: 64, 32>}, {pipeline_mode = #tpu.pipeline_mode<synchronous>, transform_indices = @transform_12, window_bounds = array<i64: 1, 32>}, {pipeline_mode = #tpu.pipeline_mode<synchronous>, transform_indices = @transform_13, window_bounds = array<i64: 32, 32>}, {pipeline_mode = #tpu.pipeline_mode<synchronous>, transform_indices = @transform_14, window_bounds = array<i64: 1, 32>}, {pipeline_mode = #tpu.pipeline_mode<synchronous>, transform_indices = @transform_15, window_bounds = array<i64: 1, 32>}, {pipeline_mode = #tpu.pipeline_mode<synchronous>, transform_indices = @transform_16, window_bounds = array<i64: 1, 1>}, {transform_indices = @transform_17, window_bounds = array<i64: 1, 128>}]} {
    %c0 = arith.constant 0 : index
    %c0_0 = arith.constant 0 : index
    %0 = vector.load %arg1[%c0, %c0_0] : memref<128x32xbf16, #tpu.memory_space<vmem>>, vector<128x32xbf16>
    %c0_1 = arith.constant 0 : index
    %c0_2 = arith.constant 0 : index
    %1 = vector.load %arg2[%c0_1, %c0_2] : memref<32x128xbf16, #tpu.memory_space<vmem>>, vector<32x128xbf16>
    %cst = arith.constant dense<0.000000e+00> : vector<128x128xf32>
    %2 = tpu.matmul %0, %1, %cst {dimension_numbers = #tpu.dot_dimension_numbers<[1], [0], [0], [1], [0, 0, 1, 1], [], []>} : vector<128x32xbf16>, vector<32x128xbf16>, vector<128x128xf32> -> vector<128x128xf32>
    %c0_3 = arith.constant 0 : index
    %c0_4 = arith.constant 0 : index
    %3 = vector.load %arg3[%c0_3, %c0_4] : memref<1x128xf32, #tpu.memory_space<vmem>>, vector<1x128xf32>
    %4 = vector.broadcast %3 : vector<1x128xf32> to vector<128x128xf32>
    %5 = arith.addf %2, %4 : vector<128x128xf32>
    %6 = arith.truncf %5 : vector<128x128xf32> to vector<128x128xbf16>
    %cst_5 = arith.constant 0.000000e+00 : bf16
    %7 = vector.broadcast %cst_5 : bf16 to vector<128x128xbf16>
    %8 = arith.maximumf %6, %7 : vector<128x128xbf16>
    %c0_6 = arith.constant 0 : index
    %c0_7 = arith.constant 0 : index
    %9 = vector.load %arg4[%c0_6, %c0_7] : memref<128x128xbf16, #tpu.memory_space<vmem>>, vector<128x128xbf16>
    %cst_8 = arith.constant dense<0.000000e+00> : vector<128x128xf32>
    %10 = tpu.matmul %8, %9, %cst_8 {dimension_numbers = #tpu.dot_dimension_numbers<[1], [0], [0], [1], [0, 0, 1, 1], [], []>} : vector<128x128xbf16>, vector<128x128xbf16>, vector<128x128xf32> -> vector<128x128xf32>
    %c0_9 = arith.constant 0 : index
    %c0_10 = arith.constant 0 : index
    %11 = vector.load %arg5[%c0_9, %c0_10] : memref<1x128xf32, #tpu.memory_space<vmem>>, vector<1x128xf32>
    %12 = vector.broadcast %11 : vector<1x128xf32> to vector<128x128xf32>
    %13 = arith.addf %10, %12 : vector<128x128xf32>
    %14 = arith.truncf %13 : vector<128x128xf32> to vector<128x128xbf16>
    %cst_11 = arith.constant 0.000000e+00 : bf16
    %15 = vector.broadcast %cst_11 : bf16 to vector<128x128xbf16>
    %16 = arith.maximumf %14, %15 : vector<128x128xbf16>
    %c0_12 = arith.constant 0 : index
    %c0_13 = arith.constant 0 : index
    %17 = vector.load %arg6[%c0_12, %c0_13] : memref<128x128xbf16, #tpu.memory_space<vmem>>, vector<128x128xbf16>
    %cst_14 = arith.constant dense<0.000000e+00> : vector<128x128xf32>
    %18 = tpu.matmul %16, %17, %cst_14 {dimension_numbers = #tpu.dot_dimension_numbers<[1], [0], [0], [1], [0, 0, 1, 1], [], []>} : vector<128x128xbf16>, vector<128x128xbf16>, vector<128x128xf32> -> vector<128x128xf32>
    %c0_15 = arith.constant 0 : index
    %c0_16 = arith.constant 0 : index
    %19 = vector.load %arg7[%c0_15, %c0_16] : memref<1x128xf32, #tpu.memory_space<vmem>>, vector<1x128xf32>
    %20 = vector.broadcast %19 : vector<1x128xf32> to vector<128x128xf32>
    %21 = arith.addf %18, %20 : vector<128x128xf32>
    %22 = arith.truncf %21 : vector<128x128xf32> to vector<128x128xbf16>
    %23 = arith.addf %22, %8 : vector<128x128xbf16>
    %cst_17 = arith.constant 0.000000e+00 : bf16
    %24 = vector.broadcast %cst_17 : bf16 to vector<128x128xbf16>
    %25 = arith.maximumf %23, %24 : vector<128x128xbf16>
    %c0_18 = arith.constant 0 : index
    %c0_19 = arith.constant 0 : index
    %26 = vector.load %arg8[%c0_18, %c0_19] : memref<128x64xbf16, #tpu.memory_space<vmem>>, vector<128x64xbf16>
    %cst_20 = arith.constant dense<0.000000e+00> : vector<128x64xf32>
    %27 = tpu.matmul %25, %26, %cst_20 {dimension_numbers = #tpu.dot_dimension_numbers<[1], [0], [0], [1], [0, 0, 1, 1], [], []>} : vector<128x128xbf16>, vector<128x64xbf16>, vector<128x64xf32> -> vector<128x64xf32>
    %c0_21 = arith.constant 0 : index
    %c0_22 = arith.constant 0 : index
    %28 = vector.load %arg9[%c0_21, %c0_22] : memref<1x64xf32, #tpu.memory_space<vmem>>, vector<1x64xf32>
    %29 = vector.broadcast %28 : vector<1x64xf32> to vector<128x64xf32>
    %30 = arith.addf %27, %29 : vector<128x64xf32>
    %31 = arith.truncf %30 : vector<128x64xf32> to vector<128x64xbf16>
    %cst_23 = arith.constant 0.000000e+00 : bf16
    %32 = vector.broadcast %cst_23 : bf16 to vector<128x64xbf16>
    %33 = arith.maximumf %31, %32 : vector<128x64xbf16>
    %c0_24 = arith.constant 0 : index
    %c0_25 = arith.constant 0 : index
    %34 = vector.load %arg10[%c0_24, %c0_25] : memref<64x64xbf16, #tpu.memory_space<vmem>>, vector<64x64xbf16>
    %cst_26 = arith.constant dense<0.000000e+00> : vector<128x64xf32>
    %35 = tpu.matmul %33, %34, %cst_26 {dimension_numbers = #tpu.dot_dimension_numbers<[1], [0], [0], [1], [0, 0, 1, 1], [], []>} : vector<128x64xbf16>, vector<64x64xbf16>, vector<128x64xf32> -> vector<128x64xf32>
    %c0_27 = arith.constant 0 : index
    %c0_28 = arith.constant 0 : index
    %36 = vector.load %arg11[%c0_27, %c0_28] : memref<1x64xf32, #tpu.memory_space<vmem>>, vector<1x64xf32>
    %37 = vector.broadcast %36 : vector<1x64xf32> to vector<128x64xf32>
    %38 = arith.addf %35, %37 : vector<128x64xf32>
    %39 = arith.truncf %38 : vector<128x64xf32> to vector<128x64xbf16>
    %cst_29 = arith.constant 0.000000e+00 : bf16
    %40 = vector.broadcast %cst_29 : bf16 to vector<128x64xbf16>
    %41 = arith.maximumf %39, %40 : vector<128x64xbf16>
    %c0_30 = arith.constant 0 : index
    %c0_31 = arith.constant 0 : index
    %42 = vector.load %arg12[%c0_30, %c0_31] : memref<64x32xbf16, #tpu.memory_space<vmem>>, vector<64x32xbf16>
    %cst_32 = arith.constant dense<0.000000e+00> : vector<128x32xf32>
    %43 = tpu.matmul %41, %42, %cst_32 {dimension_numbers = #tpu.dot_dimension_numbers<[1], [0], [0], [1], [0, 0, 1, 1], [], []>} : vector<128x64xbf16>, vector<64x32xbf16>, vector<128x32xf32> -> vector<128x32xf32>
    %c0_33 = arith.constant 0 : index
    %c0_34 = arith.constant 0 : index
    %44 = vector.load %arg13[%c0_33, %c0_34] : memref<1x32xf32, #tpu.memory_space<vmem>>, vector<1x32xf32>
    %45 = vector.broadcast %44 : vector<1x32xf32> to vector<128x32xf32>
    %46 = arith.addf %43, %45 : vector<128x32xf32>
    %47 = arith.truncf %46 : vector<128x32xf32> to vector<128x32xbf16>
    %cst_35 = arith.constant 0.000000e+00 : bf16
    %48 = vector.broadcast %cst_35 : bf16 to vector<128x32xbf16>
    %49 = arith.maximumf %47, %48 : vector<128x32xbf16>
    %c0_36 = arith.constant 0 : index
    %c0_37 = arith.constant 0 : index
    %50 = vector.load %arg14[%c0_36, %c0_37] : memref<32x32xbf16, #tpu.memory_space<vmem>>, vector<32x32xbf16>
    %cst_38 = arith.constant dense<0.000000e+00> : vector<128x32xf32>
    %51 = tpu.matmul %49, %50, %cst_38 {dimension_numbers = #tpu.dot_dimension_numbers<[1], [0], [0], [1], [0, 0, 1, 1], [], []>} : vector<128x32xbf16>, vector<32x32xbf16>, vector<128x32xf32> -> vector<128x32xf32>
    %c0_39 = arith.constant 0 : index
    %c0_40 = arith.constant 0 : index
    %52 = vector.load %arg15[%c0_39, %c0_40] : memref<1x32xf32, #tpu.memory_space<vmem>>, vector<1x32xf32>
    %53 = vector.broadcast %52 : vector<1x32xf32> to vector<128x32xf32>
    %54 = arith.addf %51, %53 : vector<128x32xf32>
    %55 = arith.truncf %54 : vector<128x32xf32> to vector<128x32xbf16>
    %cst_41 = arith.constant 0.000000e+00 : bf16
    %56 = vector.broadcast %cst_41 : bf16 to vector<128x32xbf16>
    %57 = arith.maximumf %55, %56 : vector<128x32xbf16>
    %c0_42 = arith.constant 0 : index
    %c0_43 = arith.constant 0 : index
    %58 = vector.load %arg16[%c0_42, %c0_43] : memref<1x32xbf16, #tpu.memory_space<vmem>>, vector<1x32xbf16>
    "tpu.trace_start"() <{level = 10 : i32, message = "ok,tk->ot"}> : () -> ()
    %cst_44 = arith.constant dense<0.000000e+00> : vector<1x128xf32>
    %59 = tpu.matmul %58, %57, %cst_44 {dimension_numbers = #tpu.dot_dimension_numbers<[1], [1], [0], [0], [0, 0, 1, 0], [], []>} : vector<1x32xbf16>, vector<128x32xbf16>, vector<1x128xf32> -> vector<1x128xf32>
    "tpu.trace_stop"() : () -> ()
    %c0_45 = arith.constant 0 : index
    %c0_46 = arith.constant 0 : index
    %60 = vector.load %arg17[%c0_45, %c0_46] : memref<1x1xf32, #tpu.memory_space<vmem>>, vector<1x1xf32>
    %61 = vector.broadcast %60 : vector<1x1xf32> to vector<1x128xf32>
    %62 = arith.addf %59, %61 : vector<1x128xf32>
    %c0_47 = arith.constant 0 : index
    %c0_48 = arith.constant 0 : index
    %63 = vector.load %arg18[%c0_47, %c0_48] : memref<1x128xf32, #tpu.memory_space<vmem>>, vector<1x128xf32>
    tpu.vector_store %arg18[%c0_47, %c0_48], %62 {strides = array<i32>} : memref<1x128xf32, #tpu.memory_space<vmem>>, vector<1x128xf32>,
    return
  }
  func.func @transform_0(%arg0: i32) -> (i32, i32) {
    %c0_i32 = arith.constant 0 : i32
    %c0_i32_0 = arith.constant 0 : i32
    return %arg0, %c0_i32 : i32, i32
  }
  func.func @transform_1(%arg0: i32) -> (i32, i32) {
    %c0_i32 = arith.constant 0 : i32
    %c0_i32_0 = arith.constant 0 : i32
    %c0_i32_1 = arith.constant 0 : i32
    return %c0_i32, %c0_i32_0 : i32, i32
  }
  func.func @transform_2(%arg0: i32) -> (i32, i32) {
    %c0_i32 = arith.constant 0 : i32
    %c0_i32_0 = arith.constant 0 : i32
    %c0_i32_1 = arith.constant 0 : i32
    return %c0_i32, %c0_i32_0 : i32, i32
  }
  func.func @transform_3(%arg0: i32) -> (i32, i32) {
    %c0_i32 = arith.constant 0 : i32
    %c0_i32_0 = arith.constant 0 : i32
    %c0_i32_1 = arith.constant 0 : i32
    return %c0_i32, %c0_i32_0 : i32, i32
  }
  func.func @transform_4(%arg0: i32) -> (i32, i32) {
    %c0_i32 = arith.constant 0 : i32
    %c0_i32_0 = arith.constant 0 : i32
    %c0_i32_1 = arith.constant 0 : i32
    return %c0_i32, %c0_i32_0 : i32, i32
  }
  func.func @transform_5(%arg0: i32) -> (i32, i32) {
    %c0_i32 = arith.constant 0 : i32
    %c0_i32_0 = arith.constant 0 : i32
    %c0_i32_1 = arith.constant 0 : i32
    return %c0_i32, %c0_i32_0 : i32, i32
  }
  func.func @transform_6(%arg0: i32) -> (i32, i32) {
    %c0_i32 = arith.constant 0 : i32
    %c0_i32_0 = arith.constant 0 : i32
    %c0_i32_1 = arith.constant 0 : i32
    return %c0_i32, %c0_i32_0 : i32, i32
  }
  func.func @transform_7(%arg0: i32) -> (i32, i32) {
    %c0_i32 = arith.constant 0 : i32
    %c0_i32_0 = arith.constant 0 : i32
    %c0_i32_1 = arith.constant 0 : i32
    return %c0_i32, %c0_i32_0 : i32, i32
  }
  func.func @transform_8(%arg0: i32) -> (i32, i32) {
    %c0_i32 = arith.constant 0 : i32
    %c0_i32_0 = arith.constant 0 : i32
    %c0_i32_1 = arith.constant 0 : i32
    return %c0_i32, %c0_i32_0 : i32, i32
  }
  func.func @transform_9(%arg0: i32) -> (i32, i32) {
    %c0_i32 = arith.constant 0 : i32
    %c0_i32_0 = arith.constant 0 : i32
    %c0_i32_1 = arith.constant 0 : i32
    return %c0_i32, %c0_i32_0 : i32, i32
  }
  func.func @transform_10(%arg0: i32) -> (i32, i32) {
    %c0_i32 = arith.constant 0 : i32
    %c0_i32_0 = arith.constant 0 : i32
    %c0_i32_1 = arith.constant 0 : i32
    return %c0_i32, %c0_i32_0 : i32, i32
  }
  func.func @transform_11(%arg0: i32) -> (i32, i32) {
    %c0_i32 = arith.constant 0 : i32
    %c0_i32_0 = arith.constant 0 : i32
    %c0_i32_1 = arith.constant 0 : i32
    return %c0_i32, %c0_i32_0 : i32, i32
  }
  func.func @transform_12(%arg0: i32) -> (i32, i32) {
    %c0_i32 = arith.constant 0 : i32
    %c0_i32_0 = arith.constant 0 : i32
    %c0_i32_1 = arith.constant 0 : i32
    return %c0_i32, %c0_i32_0 : i32, i32
  }
  func.func @transform_13(%arg0: i32) -> (i32, i32) {
    %c0_i32 = arith.constant 0 : i32
    %c0_i32_0 = arith.constant 0 : i32
    %c0_i32_1 = arith.constant 0 : i32
    return %c0_i32, %c0_i32_0 : i32, i32
  }
  func.func @transform_14(%arg0: i32) -> (i32, i32) {
    %c0_i32 = arith.constant 0 : i32
    %c0_i32_0 = arith.constant 0 : i32
    %c0_i32_1 = arith.constant 0 : i32
    return %c0_i32, %c0_i32_0 : i32, i32
  }
  func.func @transform_15(%arg0: i32) -> (i32, i32) {
    %c0_i32 = arith.constant 0 : i32
    %c0_i32_0 = arith.constant 0 : i32
    %c0_i32_1 = arith.constant 0 : i32
    return %c0_i32, %c0_i32_0 : i32, i32
  }
  func.func @transform_16(%arg0: i32) -> (i32, i32) {
    %c0_i32 = arith.constant 0 : i32
    %c0_i32_0 = arith.constant 0 : i32
    %c0_i32_1 = arith.constant 0 : i32
    return %c0_i32, %c0_i32_0 : i32, i32
  }
  func.func @transform_17(%arg0: i32) -> (i32, i32) {
    %c0_i32 = arith.constant 0 : i32
    %c0_i32_0 = arith.constant 0 : i32
    return %c0_i32, %arg0 : i32, i32
  }
}

</mosaic_0001>

<bundles_post_ra>
// kernel: _forward_impl.1
= control target key start
LH: loop header
LB: loop body
LE: loop exit
PB: predicated region body
PF: predicated region fallthrough
CT: control target
= control target key end

     0   :  { %s3026_s0 = inlined_call_operand.vmem [shape: bf16[384,32], index: 0, kind: input, shape index: {}]   ;;  %s3027_s1 = inlined_call_operand.vmem [shape: bf16[32,128], index: 1, kind: input, shape index: {}]   ;;  %s3028_s2 = inlined_call_operand.vmem [shape: f32[1,128], index: 2, kind: input, shape index: {}]   ;;  %s3029_s3 = inlined_call_operand.vmem [shape: bf16[128,128], index: 3, kind: input, shape index: {}]   ;;  %s3030_s4 = inlined_call_operand.vmem [shape: f32[1,128], index: 4, kind: input, shape index: {}]   ;;  %s3031_s5 = inlined_call_operand.vmem [shape: bf16[128,128], index: 5, kind: input, shape index: {}]   ;;  %s3032_s6 = inlined_call_operand.vmem [shape: f32[1,128], index: 6, kind: input, shape index: {}]   ;;  %s3033_s7 = inlined_call_operand.vmem [shape: bf16[128,64], index: 7, kind: input, shape index: {}]   ;;  %s3034_s8 = inlined_call_operand.vmem [shape: f32[1,64], index: 8, kind: input, shape index: {}]   ;;  %s3035_s9 = inlined_call_operand.vmem [shape: bf16[64,64], index: 9, kind: input, shape index: {}]   ;;  %s3036_s10 = inlined_call_operand.vmem [shape: f32[1,64], index: 10, kind: input, shape index: {}]   ;;  %s3037_s11 = inlined_call_operand.vmem [shape: bf16[64,32], index: 11, kind: input, shape index: {}]   ;;  %s3038_s12 = inlined_call_operand.vmem [shape: f32[1,32], index: 12, kind: input, shape index: {}]   ;;  %s3039_s13 = inlined_call_operand.vmem [shape: bf16[32,32], index: 13, kind: input, shape index: {}]   ;;  %s3040_s14 = inlined_call_operand.vmem [shape: f32[1,32], index: 14, kind: input, shape index: {}]   ;;  %s3041_s15 = inlined_call_operand.vmem [shape: bf16[1,32], index: 15, kind: input, shape index: {}]   ;;  %s3042_s16 = inlined_call_operand.<no memory space> [shape: f32[1,1], index: 16, kind: input, shape index: {}]   ;;  %s3043_s17 = inlined_call_operand.hbm [shape: f32[1,384], index: 17, kind: output, shape index: {}]  }
   0x1   :  { %3051 = sst [smem:[#allocation11_spill]] %s3026_s0  ;;  %v22_v0 = vstv %s3042_s16 }
   0x2   :  { %3052 = sst [smem:[#allocation12_spill]] %s3027_s1  ;;  %23 = vst [vmem:[#allocation2] sm:$0x1] %v22_v0 }
   0x3   :  { %24 = vsyncpa [#allocation4], 0 }
   0x4   :  { %26 = vsyncpa [#allocation4 + $0x1], 0  ;;  %s2648_s26 = smov 0   ;;  %s2650_s27 = smov 0  }
   0x5   :  { %s2652_s28 = smov 0   ;;  %s2654_s29 = smov 0  }
   0x6 LB: > { %3053 = sst [smem:[#allocation6_spill]] %s2537_s26  ;;  %s1987_s16 = sadd.s32 4294967295, %s2549_s29   ;;  %s2549_s29 = sphi %s2654_s29, %s3064_s29   ;;  %s2545_s28 = sphi %s2652_s28, %s3066_s28   ;;  %s2541_s27 = sphi %s2650_s27, %s3068_s27   ;;  %s2537_s26 = sphi %s2648_s26, %s3067_s26  }
   0x7   : > { %3054 = sst [smem:[#allocation7_spill]] %s2545_s28  ;;  %s1988_s0 = sadd.s32 4294967294, %s2549_s29  }
   0x8   : > { %s2671_s30 = sadd.s32 1, %s2549_s29   ;;  %s401_s18 = sadd.s32 1, %s2545_s28 }
   0x9   : > { %3055 = sst [smem:[#allocation8_spill]] %s2671_s30  ;;  %s398_s19 = ssub.s32 %s2549_s29, %s2671_s30 }
   0xa   : > { %p411_p0 = scmp.ne.s32.totalorder %s2545_s28, %s2541_s27  ;;  %p399_p1 = scmp.eq.s32.totalorder %s398_s19, 0 }
   0xb   : > { %p412_p2 = scmp.eq.s32.totalorder %s1987_s16, 2  ;;  %p417_p3 = scmp.ne.s32.totalorder %s2541_s27, %s2537_s26 }
   0xc   : > { %p418_p4 = scmp.eq.s32.totalorder %s1988_s0, 2  ;;  %p1991_p7 = scmp.ge.s32.totalorder %s2549_s29, 1 }
   0xd   : > { %s2681_s1 = scalar_select %p399_p1, %s2545_s28, %s401_s18  }
   0xe   : > { %p2683_p5 = por %p412_p2, %p411_p0  ;;  %p2687_p6 = por %p418_p4, %p417_p3 }
   0xf   : > { %3056 = sst [smem:[#allocation9_spill]] %s2681_s1  ;;  %p493_p8 = scmp.lt.s32.totalorder %s2549_s29, 4 }
  0x10   : > { %s3058_s21 = scalar_select %p2687_p6, 1, 0 }
  0x11   : > { %p494_p9 = pnand %p1991_p7, %p493_p8 }
  0x12   : > { %3059 = sst [smem:[#allocation10_spill]] %s3058_s21  ;;  %s2696_s25 = sshll.u32 (!%p494_p9), %s1987_s16, 4 }
  0x13   : > { %497 = sbr.rel (%p494_p9) target bundleno = 1772 (0x6ec), region = 88  ;;  %s3060_s24 = sld [smem:[#allocation12_spill]] (!%p494_p9) }
  0x14   : > { %p545_p10 = scmp.lt.s32.totalorder (!%p494_p9), %s2696_s25, 47  ;;  %s3061_s0 = sld [smem:[#allocation11_spill]] (!%p494_p9) }
  0x15   : > { %s542_s19 = sand.u32 (!%p494_p9), 1, %s2541_s27   ;;  %s2554_s1 = smov (!%p494_p9), [#allocation3]  }
  0x16   : > { %s2493_s21 = sshll.u32 (!%p494_p9), %s2554_s1, 4  ;;  %s2494_s21 = int_to_ptr.vmem [resolvable:$false] %s2493_s21 }
  0x17   : > { %s2495_s26 = scalar_lea.vmem (!%p494_p9), %s2494_s21, 32 }
  0x18   : > { %v2455_v3 = vld [vmem:[%s3029_s3 + $0x38] sm:$0xff]   ;;  %s546_s28 = scalar_select %p545_p10, %s2696_s25, 47  ;;  %v2456_v4 = vld [vmem:[%s3029_s3 + $0x30] sm:$0xff]   ;;  %vm630_vm0 = vcmask 261120   ;;  %v2457_v5 = vld [vmem:[%s3029_s3 + $0x28] sm:$0xff]   ;;  %v2551_v19 = vmov 0  }
  0x19   : > { %v2445_v1 = vld [vmem:[%s3060_s24 + $0x8] sm:$0xff]   ;;  %v2446_v2 = vld [vmem:[%s3060_s24] sm:$0xff]   ;;  %2202 = vmatprep.subr.bf16.mxu1 %v2455_v3  ;;  %v2459_v10 = vld [vmem:[%s3029_s3 + $0x18] sm:$0xff]   ;;  %2444 = vset.pattern.permute.xlu0 %v2551_v19  ;;  %vm1367_vm1 = vcmask 523264   ;;  %vm2553_vm2 = vmmov 0  }
  0x1a   : > { %2182 = vmatprep.subr.bf16.mxu0 %v2445_v1  ;;  %s1993_s16 = sshll.u32 %s546_s28, 2  ;;  %2203 = vmatpush3.bf16.msra.mxu1 %v2455_v3  ;;  %v2458_v9 = vld [vmem:[%s3029_s3 + $0x20] sm:$0xff]   ;;  %v2460_v16 = vld [vmem:[%s3029_s3 + $0x10] sm:$0xff]   ;;  %v2461_v17 = vld [vmem:[%s3029_s3 + $0x8] sm:$0xff]   ;;  %s1921_s28 = scalar_lea.sflag [#allocation4], %s542_s19 }
  0x1b   : > { %2183 = vmatpush3.bf16.msra.mxu0 %v2445_v1  ;;  %s548_s18 = scalar_lea.vmem %s3061_s0, %s1993_s16  ;;  %2204 = vmatprep.subr.bf16.mxu1 %v2456_v4  ;;  %v2462_v18 = vld [vmem:[%s3029_s3] sm:$0xff]   ;;  %v2463_v20 = vld [vmem:[%s3031_s5 + $0x38] sm:$0xff]   ;;  %v2464_v21 = vld [vmem:[%s3031_s5 + $0x30] sm:$0xff]   ;;  %s543_s16 = scalar_lea.vmem [#allocation3], %s542_s19 }
  0x1c   : > { %2184 = vmatprep.subr.bf16.mxu0 %v2446_v2  ;;  %v2447_v6 = vld [vmem:[%s548_s18] sm:$0xff]   ;;  %v2448_v7 = vld [vmem:[%s548_s18 + $0x8] sm:$0xff]   ;;  %v2449_v8 = vld [vmem:[%s548_s18 + $0x10] sm:$0xff]   ;;  %s1933_s22 = sshll.u32 %s543_s16, 4  ;;  %s2987_s22 = int_to_ptr.vmem [resolvable:$true] %s1933_s22 }
  0x1d   : > { %2186 = vmatprep.mubr.msk.bf16.mxu0 %vm630_vm0, %v2447_v6  ;;  %v2450_v11 = vld [vmem:[%s548_s18 + $0x18] sm:$0xff]   ;;  %v2451_v12 = vld [vmem:[%s548_s18 + $0x20] sm:$0xff]   ;;  %v2452_v13 = vld [vmem:[%s548_s18 + $0x28] sm:$0xff]   ;;  %s2489_s30 = scalar_lea.vmem %s2987_s22, 16  ;;  %p2496_p0 = scmp.lt.s32.totalorder %s2987_s22, %s2494_s21 }
  0x1e   : > { %2205 = vmatpush3.bf16.msra.mxu1 %v2456_v4  ;;  %v2453_v14 = vld [vmem:[%s548_s18 + $0x30] sm:$0xff]   ;;  %v2454_v15 = vld [vmem:[%s548_s18 + $0x38] sm:$0xff]   ;;  %v2465_v22 = vld [vmem:[%s3031_s5 + $0x28] sm:$0xff]   ;;  %s2985_s18 = scalar_lea.hbm %s3043_s17, %s2696_s25  ;;  %p2490_p11 = scmp.ne.s32.totalorder %s2987_s22, %s2489_s30 }
  0x1f   : > { %2185 = vmatpush3.bf16.msra.mxu0 %v2446_v2  ;;  %2206 = vmatprep.subr.bf16.mxu1 %v2457_v5  ;;  %v2466_v23 = vld [vmem:[%s3031_s5 + $0x20] sm:$0xff]   ;;  %v2467_v24 = vld [vmem:[%s3031_s5 + $0x18] sm:$0xff]   ;;  %p2497_p1 = scmp.lt.s32.totalorder %s2495_s26, %s2489_s30 }
  0x20   : > { %2234 = vmatprep.subr.bf16.mxu0 %v2463_v20  ;;  %v1994_v27 = vld [vmem:[%s3028_s2] ss:$0 sm:$0xff]  ;;  %p2491_p12 = pnand %p2490_p11, %p2683_p5 }
  0x21   : > { %p2498_p2 = por %p2497_p1, %p2496_p0 }
  0x22   : > { %2187 = vmatmul.mubr.msk.bf16.vlgmr.msra.gmra.mxu0 %vm630_vm0, %v2448_v7  ;;  %2207 = vmatpush3.bf16.msra.mxu1 %v2457_v5  ;;  %p2492_p13 = pneg %p2491_p12 }
  0x23   : > { %2190 = vmatprep.mubr.msk.bf16.mxu0 %vm630_vm0, %v2449_v8  ;;  %2208 = vmatprep.subr.bf16.mxu1 %v2458_v9 }
  0x24   : > { %2235 = vmatpush3.bf16.msra.mxu0 %v2463_v20  ;;  %p2499_p3 = pnand %p2498_p2, %p2492_p13 }
  0x25   : > { %2236 = vmatprep.subr.bf16.mxu0 %v2464_v21 }
  0x26   : > { %2209 = vmatpush3.bf16.msra.mxu1 %v2458_v9 }
  0x27   : > { %2210 = vmatprep.subr.bf16.mxu1 %v2459_v10 }
  0x28   : > { %2237 = vmatpush3.bf16.msra.mxu0 %v2464_v21  ;;  %v2013_v21 = vld [vmem:[%s3030_s4] ss:$0 sm:$0xff] }
  0x29   : > { %2238 = vmatprep.subr.bf16.mxu0 %v2465_v22 }
  0x2a   : > { %2191 = vmatmul.mubr.msk.bf16.gmra.mxu0 %vm630_vm0, %v2450_v11  ;;  %2211 = vmatpush3.bf16.msra.mxu1 %v2459_v10  ;;  %v2468_v10 = vld [vmem:[%s3031_s5 + $0x10] sm:$0xff]   ;;  %v2469_v11 = vld [vmem:[%s3031_s5 + $0x8] sm:$0xff]  }
  0x2b   : > { %2194 = vmatprep.mubr.msk.bf16.mxu0 %vm630_vm0, %v2451_v12  ;;  %2212 = vmatprep.subr.bf16.mxu1 %v2460_v16  ;;  %v2470_v12 = vld [vmem:[%s3031_s5] sm:$0xff]  }
  0x2c   : > { %2239 = vmatpush3.bf16.msra.mxu0 %v2465_v22 }
  0x2d   : > { %2240 = vmatprep.subr.bf16.mxu0 %v2466_v23 }
  0x2e   : > { %2213 = vmatpush3.bf16.msra.mxu1 %v2460_v16  ;;  %v2474_v16 = vld [vmem:[%s3033_s7 + $0x20] sm:$0xff]  }
  0x2f   : > { %2214 = vmatprep.subr.bf16.mxu1 %v2461_v17 }
  0x30   : > { %2241 = vmatpush3.bf16.msra.mxu0 %v2466_v23 }
  0x31   : > { %2242 = vmatprep.subr.bf16.mxu0 %v2467_v24 }
  0x32   : > { %2195 = vmatmul.mubr.msk.bf16.gmra.mxu0 %vm630_vm0, %v2452_v13  ;;  %2215 = vmatpush3.bf16.msra.mxu1 %v2461_v17  ;;  %v2471_v13 = vld [vmem:[%s3033_s7 + $0x38] sm:$0xff]  }
  0x33   : > { %2198 = vmatprep.mubr.msk.bf16.mxu0 %vm630_vm0, %v2453_v14  ;;  %2216 = vmatprep.subr.bf16.mxu1 %v2462_v18  ;;  %v2472_v14 = vld [vmem:[%s3033_s7 + $0x30] sm:$0xff]   ;;  %v2813_v17 = vld [vmem:[%s3033_s7 + $0x18] sm:$0xff]  }
  0x34   : > { %2243 = vmatpush3.bf16.msra.mxu0 %v2467_v24 }
  0x35   : > { %2244 = vmatprep.subr.bf16.mxu0 %v2468_v10 }
  0x36   : > { %2217 = vmatpush3.bf16.msra.mxu1 %v2462_v18 }
  0x37   : > { %2386 = vmatprep.subr.bf16.mxu1 %v2471_v13 }
  0x38   : > { %2245 = vmatpush3.bf16.msra.mxu0 %v2468_v10 }
  0x39   : > { %2246 = vmatprep.subr.bf16.mxu0 %v2469_v11 }
  0x3a   : > { %2199 = vmatmul.mubr.msk.bf16.gmra.mxu0 %vm630_vm0, %v2454_v15  ;;  %v2473_v15 = vld [vmem:[%s3033_s7 + $0x28] sm:$0xff]  }
  0x3c   : > { %2247 = vmatpush3.bf16.msra.mxu0 %v2469_v11 }
  0x3d   : > { %2248 = vmatprep.subr.bf16.mxu0 %v2470_v12 }
  0x40   : > { %2249 = vmatpush3.bf16.msra.mxu0 %v2470_v12  ;;  %v2476_v12 = vld [vmem:[%s3033_s7 + $0x10] sm:$0xff]  }
  0x41   : > { %2266 = vmatprep.subr.bf16.mxu0 %v2471_v13 }
  0xe2   : > { %v2188_v25 = vpop.f32.mrf.mxu0 }
  0xe3   : > { %v698_v30 = vadd.f32 %v2188_v25, %v1994_v27 }
  0xe4   : > { %v689_v26 = vpop.f32.mrf.mxu0 }
  0xe5   : > { %v690_v32 = vadd.f32 %v1994_v27, %v689_v26 }
  0xe6   : > { %v2189_v28 = vpop.f32.mrf.mxu0 }
  0xe7   : > { %v701_v29 = vadd.f32 %v2189_v28, %v1994_v27 }
  0xe8   : > { %v692_v31 = vpop.f32.mrf.mxu0 }
  0xe9   : > { %v693_v33 = vadd.f32 %v1994_v27, %v692_v31  ;;  %v753_v34 = vpack.c.bf16 %v701_v29, %v698_v30 }
  0xea   : > { %v2192_v35 = vpop.f32.mrf.mxu0 }
  0xeb   : > { %v752_v36 = vpack.c.bf16 %v693_v33, %v690_v32  ;;  %v2761_v40 = vmax.bf16 %v2551_v19, %v753_v34  ;;  %v714_v42 = vadd.f32 %v2192_v35, %v1994_v27 }
  0xec   : > { %v705_v37 = vpop.f32.mrf.mxu0 }
  0xed   : > { %v2758_v38 = vmax.bf16 %v2551_v19, %v752_v36  ;;  %v706_v44 = vadd.f32 %v1994_v27, %v705_v37 }
  0xee   : > { %v2193_v39 = vpop.f32.mrf.mxu0 }
  0xef   : > { %v717_v41 = vadd.f32 %v2193_v39, %v1994_v27  ;;  %2218 = vmatprep.mubr.bf16.mxu1 %v2758_v38 }
  0xf0   : > { %v708_v43 = vpop.f32.mrf.mxu0  ;;  %2219 = vmatmul.mubr.bf16.vlgmr.msra.gmra.mxu1 %v2761_v40 }
  0xf1   : > { %v709_v45 = vadd.f32 %v1994_v27, %v708_v43  ;;  %v755_v46 = vpack.c.bf16 %v717_v41, %v714_v42  ;;  %2394 = vmatpush3.bf16.msra.mxu1 %v2471_v13 }
  0xf2   : > { %v2196_v47 = vpop.f32.mrf.mxu0  ;;  %2387 = vmatprep.subr.bf16.mxu1 %v2472_v14 }
  0xf3   : > { %v754_v48 = vpack.c.bf16 %v709_v45, %v706_v44  ;;  %v2769_v52 = vmax.bf16 %v2551_v19, %v755_v46  ;;  %v730_v54 = vadd.f32 %v2196_v47, %v1994_v27 }
  0xf4   : > { %v721_v49 = vpop.f32.mrf.mxu0 }
  0xf5   : > { %v2766_v50 = vmax.bf16 %v2551_v19, %v754_v48  ;;  %v722_v56 = vadd.f32 %v1994_v27, %v721_v49  ;;  %2395 = vmatpush3.bf16.msra.mxu1 %v2472_v14 }
  0xf6   : > { %v2197_v51 = vpop.f32.mrf.mxu0  ;;  %2388 = vmatprep.subr.bf16.mxu1 %v2473_v15 }
  0xf7   : > { %v733_v53 = vadd.f32 %v2197_v51, %v1994_v27  ;;  %2222 = vmatprep.mubr.bf16.mxu1 %v2766_v50 }
  0xf8   : > { %v724_v55 = vpop.f32.mrf.mxu0  ;;  %2223 = vmatmul.mubr.bf16.gmra.mxu1 %v2769_v52 }
  0xf9   : > { %v725_v57 = vadd.f32 %v1994_v27, %v724_v55  ;;  %v757_v58 = vpack.c.bf16 %v733_v53, %v730_v54  ;;  %2396 = vmatpush3.bf16.msra.mxu1 %v2473_v15 }
  0xfa   : > { %v2200_v59 = vpop.f32.mrf.mxu0  ;;  %2389 = vmatprep.subr.bf16.mxu1 %v2474_v16 }
  0xfb   : > { %v756_v60 = vpack.c.bf16 %v725_v57, %v722_v56  ;;  %v2777_v0 = vmax.bf16 %v2551_v19, %v757_v58  ;;  %v746_v2 = vadd.f32 %v2200_v59, %v1994_v27 }
  0xfc   : > { %v737_v61 = vpop.f32.mrf.mxu0 }
  0xfd   : > { %v2774_v62 = vmax.bf16 %v2551_v19, %v756_v60  ;;  %v738_v4 = vadd.f32 %v1994_v27, %v737_v61  ;;  %2397 = vmatpush3.bf16.msra.mxu1 %v2474_v16 }
  0xfe   : > { %v2201_v63 = vpop.f32.mrf.mxu0  ;;  %2390 = vmatprep.subr.bf16.mxu1 %v2813_v17 }
  0xff   : > { %v749_v1 = vadd.f32 %v2201_v63, %v1994_v27  ;;  %2226 = vmatprep.mubr.bf16.mxu1 %v2774_v62 }
 0x100   : > { %v740_v3 = vpop.f32.mrf.mxu0  ;;  %2227 = vmatmul.mubr.bf16.gmra.mxu1 %v2777_v0 }
 0x101   : > { %v741_v5 = vadd.f32 %v1994_v27, %v740_v3  ;;  %v759_v6 = vpack.c.bf16 %v749_v1, %v746_v2  ;;  %2398 = vmatpush3.bf16.msra.mxu1 %v2813_v17 }
 0x102   : > { %2391 = vmatprep.subr.bf16.mxu1 %v2476_v12 }
 0x103   : > { %v758_v7 = vpack.c.bf16 %v741_v5, %v738_v4  ;;  %v2785_v9 = vmax.bf16 %v2551_v19, %v759_v6 }
 0x105   : > { %v2782_v8 = vmax.bf16 %v2551_v19, %v758_v7  ;;  %2399 = vmatpush3.bf16.msra.mxu1 %v2476_v12 }
 0x107   : > { %2230 = vmatprep.mubr.bf16.mxu1 %v2782_v8 }
 0x108   : > { %2231 = vmatmul.mubr.bf16.gmra.mxu1 %v2785_v9 }
 0x1b0   : > { %v2220_v18 = vpop.f32.mrf.mxu1 }
 0x1b1   : > { %v882_v24 = vadd.f32 %v2220_v18, %v2013_v21 }
 0x1b2   : > { %v873_v20 = vpop.f32.mrf.mxu1 }
 0x1b3   : > { %v874_v26 = vadd.f32 %v2013_v21, %v873_v20 }
 0x1b4   : > { %v2221_v22 = vpop.f32.mrf.mxu1 }
 0x1b5   : > { %v885_v23 = vadd.f32 %v2221_v22, %v2013_v21 }
 0x1b6   : > { %v876_v25 = vpop.f32.mrf.mxu1 }
 0x1b7   : > { %v877_v27 = vadd.f32 %v2013_v21, %v876_v25  ;;  %v937_v28 = vpack.c.bf16 %v885_v23, %v882_v24 }
 0x1b8   : > { %v2224_v29 = vpop.f32.mrf.mxu1 }
 0x1b9   : > { %v936_v30 = vpack.c.bf16 %v877_v27, %v874_v26  ;;  %v945_v33 = vmax.bf16 %v2551_v19, %v937_v28  ;;  %v898_v36 = vadd.f32 %v2224_v29, %v2013_v21 }
 0x1ba   : > { %v889_v31 = vpop.f32.mrf.mxu1 }
 0x1bb   : > { %v944_v32 = vmax.bf16 %v2551_v19, %v936_v30  ;;  %v890_v39 = vadd.f32 %v2013_v21, %v889_v31 }
 0x1bc   : > { %v2225_v34 = vpop.f32.mrf.mxu1 }
 0x1bd   : > { %v901_v35 = vadd.f32 %v2225_v34, %v2013_v21  ;;  %2250 = vmatprep.mubr.bf16.mxu0 %v944_v32 }
 0x1be   : > { %v892_v37 = vpop.f32.mrf.mxu1  ;;  %2251 = vmatmul.mubr.bf16.vlgmr.msra.gmra.mxu0 %v945_v33 }
 0x1bf   : > { %v893_v41 = vadd.f32 %v2013_v21, %v892_v37  ;;  %2267 = vmatpush3.bf16.msra.mxu0 %v2471_v13  ;;  %v939_v42 = vpack.c.bf16 %v901_v35, %v898_v36  ;;  %v2477_v13 = vld [vmem:[%s3033_s7 + $0x8] sm:$0xff]  }
 0x1c0   : > { %v2228_v43 = vpop.f32.mrf.mxu1  ;;  %2268 = vmatprep.subr.bf16.mxu0 %v2472_v14  ;;  %2392 = vmatprep.subr.bf16.mxu1 %v2477_v13 }
 0x1c1   : > { %v938_v44 = vpack.c.bf16 %v893_v41, %v890_v39  ;;  %v947_v48 = vmax.bf16 %v2551_v19, %v939_v42  ;;  %v914_v51 = vadd.f32 %v2228_v43, %v2013_v21  ;;  %2400 = vmatpush3.bf16.msra.mxu1 %v2477_v13 }
 0x1c2   : > { %v905_v45 = vpop.f32.mrf.mxu1 }
 0x1c3   : > { %v946_v46 = vmax.bf16 %v2551_v19, %v938_v44  ;;  %2269 = vmatpush3.bf16.msra.mxu0 %v2472_v14  ;;  %v906_v54 = vadd.f32 %v2013_v21, %v905_v45  ;;  %v2478_v14 = vld [vmem:[%s3033_s7] sm:$0xff]  }
 0x1c4   : > { %v2229_v47 = vpop.f32.mrf.mxu1  ;;  %2270 = vmatprep.subr.bf16.mxu0 %v2473_v15  ;;  %2393 = vmatprep.subr.bf16.mxu1 %v2478_v14 }
 0x1c5   : > { %v917_v49 = vadd.f32 %v2229_v47, %v2013_v21  ;;  %2254 = vmatprep.mubr.bf16.mxu0 %v946_v46  ;;  %2401 = vmatpush3.bf16.msra.mxu1 %v2478_v14 }
 0x1c6   : > { %v908_v53 = vpop.f32.mrf.mxu1  ;;  %2255 = vmatmul.mubr.bf16.gmra.mxu0 %v947_v48 }
 0x1c7   : > { %v909_v55 = vadd.f32 %v2013_v21, %v908_v53  ;;  %2271 = vmatpush3.bf16.msra.mxu0 %v2473_v15  ;;  %v941_v56 = vpack.c.bf16 %v917_v49, %v914_v51  ;;  %v2479_v15 = vld [vmem:[%s3035_s9 + $0x18] sm:$0xff]  }
 0x1c8   : > { %v2232_v57 = vpop.f32.mrf.mxu1  ;;  %2272 = vmatprep.subr.bf16.mxu0 %v2474_v16 }
 0x1c9   : > { %v940_v58 = vpack.c.bf16 %v909_v55, %v906_v54  ;;  %v949_v63 = vmax.bf16 %v2551_v19, %v941_v56  ;;  %v930_v2 = vadd.f32 %v2232_v57, %v2013_v21 }
 0x1ca   : > { %v921_v59 = vpop.f32.mrf.mxu1 }
 0x1cb   : > { %v948_v60 = vmax.bf16 %v2551_v19, %v940_v58  ;;  %2273 = vmatpush3.bf16.msra.mxu0 %v2474_v16  ;;  %v922_v4 = vadd.f32 %v2013_v21, %v921_v59 }
 0x1cc   : > { %v2233_v61 = vpop.f32.mrf.mxu1  ;;  %2274 = vmatprep.subr.bf16.mxu0 %v2813_v17 }
 0x1cd   : > { %v933_v1 = vadd.f32 %v2233_v61, %v2013_v21  ;;  %2258 = vmatprep.mubr.bf16.mxu0 %v948_v60 }
 0x1ce   : > { %v924_v3 = vpop.f32.mrf.mxu1  ;;  %2259 = vmatmul.mubr.bf16.gmra.mxu0 %v949_v63 }
 0x1cf   : > { %v925_v5 = vadd.f32 %v2013_v21, %v924_v3  ;;  %2275 = vmatpush3.bf16.msra.mxu0 %v2813_v17  ;;  %v943_v6 = vpack.c.bf16 %v933_v1, %v930_v2  ;;  %v2022_v17 = vld [vmem:[%s3032_s6] ss:$0 sm:$0xff] }
 0x1d0   : > { %2276 = vmatprep.subr.bf16.mxu0 %v2476_v12 }
 0x1d1   : > { %v942_v7 = vpack.c.bf16 %v925_v5, %v922_v4  ;;  %v951_v11 = vmax.bf16 %v2551_v19, %v943_v6 }
 0x1d3   : > { %v950_v10 = vmax.bf16 %v2551_v19, %v942_v7  ;;  %2277 = vmatpush3.bf16.msra.mxu0 %v2476_v12  ;;  %v2480_v12 = vld [vmem:[%s3035_s9 + $0x10] sm:$0xff]  }
 0x1d4   : > { %2278 = vmatprep.subr.bf16.mxu0 %v2477_v13 }
 0x1d5   : > { %2262 = vmatprep.mubr.bf16.mxu0 %v950_v10 }
 0x1d6   : > { %2263 = vmatmul.mubr.bf16.gmra.mxu0 %v951_v11 }
 0x1d7   : > { %2279 = vmatpush3.bf16.msra.mxu0 %v2477_v13  ;;  %v2481_v13 = vld [vmem:[%s3035_s9 + $0x8] sm:$0xff]  }
 0x1d8   : > { %2280 = vmatprep.subr.bf16.mxu0 %v2478_v14 }
 0x1db   : > { %2281 = vmatpush3.bf16.msra.mxu0 %v2478_v14 }
 0x1dc   : > { %2298 = vmatprep.subr.bf16.mxu0 %v2479_v15 }
 0x27e   : > { %v2252_v16 = vpop.f32.mrf.mxu0 }
 0x27f   : > { %v1066_v21 = vadd.f32 %v2252_v16, %v2022_v17  ;;  %v2031_v16 = vld [vmem:[%s3034_s8] ss:$0 sm:$0xff] }
 0x280   : > { %v1057_v18 = vpop.f32.mrf.mxu0 }
 0x281   : > { %v1058_v24 = vadd.f32 %v2022_v17, %v1057_v18 }
 0x282   : > { %v2253_v20 = vpop.f32.mrf.mxu0 }
 0x283   : > { %v1069_v22 = vadd.f32 %v2253_v20, %v2022_v17 }
 0x284   : > { %v1060_v23 = vpop.f32.mrf.mxu0 }
 0x285   : > { %v1121_v25 = vpack.c.bf16 %v1069_v22, %v1066_v21  ;;  %v1061_v26 = vadd.f32 %v2022_v17, %v1060_v23 }
 0x286   : > { %v2256_v27 = vpop.f32.mrf.mxu0 }
 0x287   : > { %v1120_v28 = vpack.c.bf16 %v1061_v26, %v1058_v24  ;;  %v1129_v29 = vadd.bf16 %v1121_v25, %v2761_v40  ;;  %v1082_v33 = vadd.f32 %v2256_v27, %v2022_v17 }
 0x288   : > { %v1073_v30 = vpop.f32.mrf.mxu0 }
 0x289   : > { %v1128_v31 = vadd.bf16 %v1120_v28, %v2758_v38  ;;  %v1137_v36 = vmax.bf16 %v2551_v19, %v1129_v29  ;;  %v1074_v39 = vadd.f32 %v2022_v17, %v1073_v30 }
 0x28a   : > { %v2257_v32 = vpop.f32.mrf.mxu0 }
 0x28b   : > { %v1085_v34 = vadd.f32 %v2257_v32, %v2022_v17  ;;  %v1136_v35 = vmax.bf16 %v2551_v19, %v1128_v31 }
 0x28c   : > { %v1076_v37 = vpop.f32.mrf.mxu0 }
 0x28d   : > { %v1123_v41 = vpack.c.bf16 %v1085_v34, %v1082_v33  ;;  %v1077_v42 = vadd.f32 %v2022_v17, %v1076_v37  ;;  %2282 = vmatprep.mubr.bf16.mxu0 %v1136_v35 }
 0x28e   : > { %v2260_v43 = vpop.f32.mrf.mxu0  ;;  %2283 = vmatmul.mubr.bf16.vlgmr.msra.gmra.mxu0 %v1137_v36 }
 0x28f   : > { %v1122_v44 = vpack.c.bf16 %v1077_v42, %v1074_v39  ;;  %2299 = vmatpush3.bf16.msra.mxu0 %v2479_v15  ;;  %v1131_v40 = vadd.bf16 %v1123_v41, %v2769_v52  ;;  %v1098_v47 = vadd.f32 %v2260_v43, %v2022_v17 }
 0x290   : > { %v1089_v45 = vpop.f32.mrf.mxu0  ;;  %2300 = vmatprep.subr.bf16.mxu0 %v2480_v12 }
 0x291   : > { %v1130_v38 = vadd.bf16 %v1122_v44, %v2766_v50  ;;  %v1139_v53 = vmax.bf16 %v2551_v19, %v1131_v40  ;;  %v1090_v54 = vadd.f32 %v2022_v17, %v1089_v45 }
 0x292   : > { %v2261_v46 = vpop.f32.mrf.mxu0 }
 0x293   : > { %v1101_v48 = vadd.f32 %v2261_v46, %v2022_v17  ;;  %v1138_v49 = vmax.bf16 %v2551_v19, %v1130_v38  ;;  %2301 = vmatpush3.bf16.msra.mxu0 %v2480_v12 }
 0x294   : > { %v1092_v51 = vpop.f32.mrf.mxu0  ;;  %2302 = vmatprep.subr.bf16.mxu0 %v2481_v13 }
 0x295   : > { %v1125_v55 = vpack.c.bf16 %v1101_v48, %v1098_v47  ;;  %v1093_v56 = vadd.f32 %v2022_v17, %v1092_v51  ;;  %2286 = vmatprep.mubr.bf16.mxu0 %v1138_v49 }
 0x296   : > { %v2264_v57 = vpop.f32.mrf.mxu0  ;;  %2287 = vmatmul.mubr.bf16.gmra.mxu0 %v1139_v53 }
 0x297   : > { %v1124_v58 = vpack.c.bf16 %v1093_v56, %v1090_v54  ;;  %v1133_v52 = vadd.bf16 %v1125_v55, %v2777_v0  ;;  %v1114_v61 = vadd.f32 %v2264_v57, %v2022_v17  ;;  %2303 = vmatpush3.bf16.msra.mxu0 %v2481_v13 }
 0x298   : > { %v1105_v59 = vpop.f32.mrf.mxu0 }
 0x299   : > { %v1132_v50 = vadd.bf16 %v1124_v58, %v2774_v62  ;;  %v1141_v2 = vmax.bf16 %v2551_v19, %v1133_v52  ;;  %v1106_v4 = vadd.f32 %v2022_v17, %v1105_v59 }
 0x29a   : > { %v2265_v60 = vpop.f32.mrf.mxu0 }
 0x29b   : > { %v1117_v63 = vadd.f32 %v2265_v60, %v2022_v17  ;;  %v1140_v1 = vmax.bf16 %v2551_v19, %v1132_v50 }
 0x29c   : > { %v1108_v3 = vpop.f32.mrf.mxu0 }
 0x29d   : > { %v1127_v5 = vpack.c.bf16 %v1117_v63, %v1114_v61  ;;  %v1109_v6 = vadd.f32 %v2022_v17, %v1108_v3  ;;  %2290 = vmatprep.mubr.bf16.mxu1 %v1140_v1  ;;  %v2485_v3 = vld [vmem:[%s3037_s11 + $0x8] sm:$0xff]  }
 0x29e   : > { %2291 = vmatmul.mubr.bf16.vlgmr.msra.gmra.mxu1 %v1141_v2  ;;  %v2484_v2 = vld [vmem:[%s3037_s11 + $0x10] sm:$0xff]  }
 0x29f   : > { %v1126_v7 = vpack.c.bf16 %v1109_v6, %v1106_v4  ;;  %v1135_v10 = vadd.bf16 %v1127_v5, %v2785_v9  ;;  %v2483_v9 = vld [vmem:[%s3037_s11 + $0x18] sm:$0xff]   ;;  %v2486_v4 = vld [vmem:[%s3037_s11] sm:$0xff]   ;;  %v2487_v5 = vld [vmem:[%s3039_s13 + $0x8] sm:$0xff]  }
 0x2a0   : > { %2322 = vmatprep.subr.bf16.mxu1 %v2483_v9  ;;  %v2488_v6 = vld [vmem:[%s3039_s13] sm:$0xff]  }
 0x2a1   : > { %v1134_v0 = vadd.bf16 %v1126_v7, %v2782_v8  ;;  %v1143_v11 = vmax.bf16 %v2551_v19, %v1135_v10  ;;  %v2482_v8 = vld [vmem:[%s3035_s9] sm:$0xff]   ;;  %2323 = vmatpush3.bf16.msra.mxu1 %v2483_v9 }
 0x2a2   : > { %2304 = vmatprep.subr.bf16.mxu0 %v2482_v8  ;;  %2324 = vmatprep.subr.bf16.mxu1 %v2484_v2 }
 0x2a3   : > { %v1142_v62 = vmax.bf16 %v2551_v19, %v1134_v0  ;;  %2305 = vmatpush3.bf16.msra.mxu0 %v2482_v8  ;;  %v2040_v0 = vld [vmem:[%s3036_s10] ss:$0 sm:$0xff] }
 0x2a4   : > { %2346 = vmatprep.subr.bf16.mxu0 %v2487_v5 }
 0x2a5   : > { %2294 = vmatprep.mubr.bf16.mxu1 %v1142_v62  ;;  %2325 = vmatpush3.bf16.msra.mxu1 %v2484_v2 }
 0x2a6   : > { %2295 = vmatmul.mubr.bf16.gmra.mxu1 %v1143_v11  ;;  %2326 = vmatprep.subr.bf16.mxu1 %v2485_v3 }
 0x2a9   : > { %2327 = vmatpush3.bf16.msra.mxu1 %v2485_v3 }
 0x2aa   : > { %2328 = vmatprep.subr.bf16.mxu1 %v2486_v4 }
 0x2ad   : > { %2329 = vmatpush3.bf16.msra.mxu1 %v2486_v4 }
 0x34e   : > { %v2284_v14 = vpop.f32.mrf.mxu0 }
 0x34f   : > { %v1258_v20 = vadd.f32 %v2284_v14, %v2031_v16 }
 0x350   : > { %v1249_v15 = vpop.f32.mrf.mxu0 }
 0x351   : > { %v1250_v22 = vadd.f32 %v2031_v16, %v1249_v15 }
 0x352   : > { %v2285_v17 = vpop.f32.mrf.mxu0 }
 0x353   : > { %v1261_v18 = vadd.f32 %v2285_v17, %v2031_v16 }
 0x354   : > { %v1252_v21 = vpop.f32.mrf.mxu0 }
 0x355   : > { %v1253_v23 = vadd.f32 %v2031_v16, %v1252_v21  ;;  %v1313_v24 = vpack.c.bf16 %v1261_v18, %v1258_v20 }
 0x356   : > { %v2288_v25 = vpop.f32.mrf.mxu0 }
 0x357   : > { %v1312_v26 = vpack.c.bf16 %v1253_v23, %v1250_v22  ;;  %v1321_v29 = vmax.bf16 %v2551_v19, %v1313_v24  ;;  %v1274_v32 = vadd.f32 %v2288_v25, %v2031_v16 }
 0x358   : > { %v1265_v27 = vpop.f32.mrf.mxu0 }
 0x359   : > { %v1320_v28 = vmax.bf16 %v2551_v19, %v1312_v26  ;;  %v1266_v34 = vadd.f32 %v2031_v16, %v1265_v27 }
 0x35a   : > { %v2289_v30 = vpop.f32.mrf.mxu0 }
 0x35b   : > { %v1277_v31 = vadd.f32 %v2289_v30, %v2031_v16  ;;  %2306 = vmatprep.mubr.msk.bf16.mxu0 %vm1367_vm1, %v1320_v28 }
 0x35c   : > { %v1268_v33 = vpop.f32.mrf.mxu0  ;;  %2307 = vmatmul.mubr.msk.bf16.vlgmr.msra.gmra.mxu0 %vm1367_vm1, %v1321_v29 }
 0x35d   : > { %v1269_v35 = vadd.f32 %v2031_v16, %v1268_v33  ;;  %v1315_v36 = vpack.c.bf16 %v1277_v31, %v1274_v32  ;;  %2347 = vmatpush3.bf16.msra.mxu0 %v2487_v5 }
 0x35e   : > { %v2292_v37 = vpop.f32.mrf.mxu1  ;;  %2348 = vmatprep.subr.bf16.mxu0 %v2488_v6 }
 0x35f   : > { %v1314_v39 = vpack.c.bf16 %v1269_v35, %v1266_v34  ;;  %v1323_v43 = vmax.bf16 %v2551_v19, %v1315_v36  ;;  %v1290_v45 = vadd.f32 %v2292_v37, %v2031_v16 }
 0x360   : > { %v1281_v41 = vpop.f32.mrf.mxu1 }
 0x361   : > { %v1322_v42 = vmax.bf16 %v2551_v19, %v1314_v39  ;;  %v1282_v46 = vadd.f32 %v2031_v16, %v1281_v41  ;;  %2349 = vmatpush3.bf16.msra.mxu0 %v2488_v6 }
 0x362   : > { %v2293_v44 = vpop.f32.mrf.mxu1 }
 0x363   : > { %v1293_v40 = vadd.f32 %v2293_v44, %v2031_v16  ;;  %2310 = vmatprep.mubr.msk.bf16.mxu0 %vm1367_vm1, %v1322_v42 }
 0x364   : > { %v1284_v38 = vpop.f32.mrf.mxu1  ;;  %2311 = vmatmul.mubr.msk.bf16.gmra.mxu0 %vm1367_vm1, %v1323_v43 }
 0x365   : > { %v1285_v47 = vadd.f32 %v2031_v16, %v1284_v38  ;;  %v1317_v48 = vpack.c.bf16 %v1293_v40, %v1290_v45 }
 0x366   : > { %v2296_v49 = vpop.f32.mrf.mxu1 }
 0x367   : > { %v1316_v51 = vpack.c.bf16 %v1285_v47, %v1282_v46  ;;  %v1325_v55 = vmax.bf16 %v2551_v19, %v1317_v48  ;;  %v1306_v58 = vadd.f32 %v2296_v49, %v2031_v16 }
 0x368   : > { %v1297_v53 = vpop.f32.mrf.mxu1 }
 0x369   : > { %v1324_v54 = vmax.bf16 %v2551_v19, %v1316_v51  ;;  %v1298_v59 = vadd.f32 %v2031_v16, %v1297_v53 }
 0x36a   : > { %v2297_v56 = vpop.f32.mrf.mxu1 }
 0x36b   : > { %v1309_v57 = vadd.f32 %v2297_v56, %v2031_v16  ;;  %2314 = vmatprep.mubr.msk.bf16.mxu0 %vm1367_vm1, %v1324_v54 }
 0x36c   : > { %v1300_v52 = vpop.f32.mrf.mxu1  ;;  %2315 = vmatmul.mubr.msk.bf16.gmra.mxu0 %vm1367_vm1, %v1325_v55 }
 0x36d   : > { %v1301_v50 = vadd.f32 %v2031_v16, %v1300_v52  ;;  %v1319_v60 = vpack.c.bf16 %v1309_v57, %v1306_v58  ;;  %v2053_v52 = vld [vmem:[%s3038_s12] ss:$0 sm:$0xff] }
 0x36f   : > { %v1318_v61 = vpack.c.bf16 %v1301_v50, %v1298_v59  ;;  %v1327_v1 = vmax.bf16 %v2551_v19, %v1319_v60 }
 0x371   : > { %v1326_v63 = vmax.bf16 %v2551_v19, %v1318_v61 }
 0x373   : > { %2318 = vmatprep.mubr.msk.bf16.mxu0 %vm1367_vm1, %v1326_v63 }
 0x374   : > { %2319 = vmatmul.mubr.msk.bf16.gmra.mxu0 %vm1367_vm1, %v1327_v1 }
 0x41c   : > { %v2308_v7 = vpop.f32.mrf.mxu0 }
 0x41d   : > { %v1435_v12 = vadd.f32 %v2308_v7, %v2040_v0 }
 0x41e   : > { %v1426_v10 = vpop.f32.mrf.mxu0 }
 0x41f   : > { %v1427_v8 = vadd.f32 %v2040_v0, %v1426_v10 }
 0x420   : > { %v2309_v62 = vpop.f32.mrf.mxu0 }
 0x421   : > { %v1438_v11 = vadd.f32 %v2309_v62, %v2040_v0 }
 0x422   : > { %v1429_v13 = vpop.f32.mrf.mxu0 }
 0x423   : > { %v1430_v9 = vadd.f32 %v2040_v0, %v1429_v13  ;;  %v1490_v14 = vpack.c.bf16 %v1438_v11, %v1435_v12 }
 0x424   : > { %v2312_v15 = vpop.f32.mrf.mxu0 }
 0x425   : > { %v1489_v16 = vpack.c.bf16 %v1430_v9, %v1427_v8  ;;  %v1498_v20 = vmax.bf16 %v2551_v19, %v1490_v14  ;;  %v1451_v23 = vadd.f32 %v2312_v15, %v2040_v0 }
 0x426   : > { %v1442_v17 = vpop.f32.mrf.mxu0 }
 0x427   : > { %v1497_v18 = vmax.bf16 %v2551_v19, %v1489_v16  ;;  %v1443_v25 = vadd.f32 %v2040_v0, %v1442_v17 }
 0x428   : > { %v2313_v21 = vpop.f32.mrf.mxu0 }
 0x429   : > { %v1454_v22 = vadd.f32 %v2313_v21, %v2040_v0  ;;  %2330 = vmatprep.mubr.msk.bf16.mxu1 %vm1367_vm1, %v1497_v18 }
 0x42a   : > { %v1445_v24 = vpop.f32.mrf.mxu0  ;;  %2331 = vmatmul.mubr.msk.bf16.vlgmr.msra.gmra.mxu1 %vm1367_vm1, %v1498_v20 }
 0x42b   : > { %v1446_v26 = vadd.f32 %v2040_v0, %v1445_v24  ;;  %v1492_v27 = vpack.c.bf16 %v1454_v22, %v1451_v23 }
 0x42c   : > { %v2316_v28 = vpop.f32.mrf.mxu0 }
 0x42d   : > { %v1491_v29 = vpack.c.bf16 %v1446_v26, %v1443_v25  ;;  %v1500_v32 = vmax.bf16 %v2551_v19, %v1492_v27  ;;  %v1467_v35 = vadd.f32 %v2316_v28, %v2040_v0 }
 0x42e   : > { %v1458_v30 = vpop.f32.mrf.mxu0 }
 0x42f   : > { %v1499_v31 = vmax.bf16 %v2551_v19, %v1491_v29  ;;  %v1459_v37 = vadd.f32 %v2040_v0, %v1458_v30 }
 0x430   : > { %v2317_v33 = vpop.f32.mrf.mxu0 }
 0x431   : > { %v1470_v34 = vadd.f32 %v2317_v33, %v2040_v0  ;;  %2334 = vmatprep.mubr.msk.bf16.mxu1 %vm1367_vm1, %v1499_v31 }
 0x432   : > { %v1461_v36 = vpop.f32.mrf.mxu0  ;;  %2335 = vmatmul.mubr.msk.bf16.gmra.mxu1 %vm1367_vm1, %v1500_v32 }
 0x433   : > { %v1462_v39 = vadd.f32 %v2040_v0, %v1461_v36  ;;  %v1494_v41 = vpack.c.bf16 %v1470_v34, %v1467_v35 }
 0x434   : > { %v2320_v42 = vpop.f32.mrf.mxu0 }
 0x435   : > { %v1493_v43 = vpack.c.bf16 %v1462_v39, %v1459_v37  ;;  %v1502_v45 = vmax.bf16 %v2551_v19, %v1494_v41  ;;  %v1483_v47 = vadd.f32 %v2320_v42, %v2040_v0 }
 0x436   : > { %v1474_v44 = vpop.f32.mrf.mxu0 }
 0x437   : > { %v1501_v40 = vmax.bf16 %v2551_v19, %v1493_v43  ;;  %v1475_v49 = vadd.f32 %v2040_v0, %v1474_v44  ;;  %v2552_v43 = vmov 0.0   ;;  %v1842_v44 = vld [vmem:[#allocation2] sm:$0x1] }
 0x438   : > { %v2321_v38 = vpop.f32.mrf.mxu0  ;;  %2366 = vmatprep.subr.bf16.mxu1 %v2552_v43  ;;  %1845 = vperm.xlu0 %2444, %v1842_v44  }
 0x439   : > { %v1486_v46 = vadd.f32 %v2321_v38, %v2040_v0  ;;  %2338 = vmatprep.mubr.msk.bf16.mxu1 %vm1367_vm1, %v1501_v40 }
 0x43a   : > { %v1477_v48 = vpop.f32.mrf.mxu0  ;;  %2339 = vmatmul.mubr.msk.bf16.gmra.mxu1 %vm1367_vm1, %v1502_v45  ;;  %v2066_v45 = vld [vmem:[%s3040_s14] ss:$0 sm:$0xff] }
 0x43b   : > { %v1478_v51 = vadd.f32 %v2040_v0, %v1477_v48  ;;  %v1496_v53 = vpack.c.bf16 %v1486_v46, %v1483_v47 }
 0x43d   : > { %v1495_v54 = vpack.c.bf16 %v1478_v51, %v1475_v49  ;;  %v1504_v56 = vmax.bf16 %v2551_v19, %v1496_v53 }
 0x43f   : > { %v1503_v55 = vmax.bf16 %v2551_v19, %v1495_v54 }
 0x441   : > { %2342 = vmatprep.mubr.msk.bf16.mxu1 %vm1367_vm1, %v1503_v55 }
 0x442   : > { %2343 = vmatmul.mubr.msk.bf16.gmra.mxu1 %vm1367_vm1, %v1504_v56 }
 0x443   : > { %2382 = vmatprep.mubr.msk.bf16.mxu1 %vm2553_vm2, %v2552_v43 }
 0x4b3   : > { %v1846_v44 = vpop.permute.xlu0 %1845 }
 0x4ea   : > { %v2332_v57 = vpop.f32.mrf.mxu1 }
 0x4eb   : > { %v1611_v60 = vadd.f32 %v2332_v57, %v2053_v52 }
 0x4ec   : > { %v1602_v58 = vpop.f32.mrf.mxu1 }
 0x4ed   : > { %v1603_v63 = vadd.f32 %v2053_v52, %v1602_v58 }
 0x4ee   : > { %v2333_v59 = vpop.f32.mrf.mxu1 }
 0x4ef   : > { %v1614_v50 = vadd.f32 %v2333_v59, %v2053_v52 }
 0x4f0   : > { %v1605_v61 = vpop.f32.mrf.mxu1 }
 0x4f1   : > { %v1606_v1 = vadd.f32 %v2053_v52, %v1605_v61  ;;  %v1666_v2 = vpack.c.bf16 %v1614_v50, %v1611_v60 }
 0x4f2   : > { %v2336_v3 = vpop.f32.mrf.mxu1 }
 0x4f3   : > { %v1665_v4 = vpack.c.bf16 %v1606_v1, %v1603_v63  ;;  %v1674_v7 = vmax.bf16 %v2551_v19, %v1666_v2  ;;  %v1627_v62 = vadd.f32 %v2336_v3, %v2053_v52 }
 0x4f4   : > { %v1618_v5 = vpop.f32.mrf.mxu1 }
 0x4f5   : > { %v1673_v6 = vmax.bf16 %v2551_v19, %v1665_v4  ;;  %v1619_v12 = vadd.f32 %v2053_v52, %v1618_v5 }
 0x4f6   : > { %v2337_v10 = vpop.f32.mrf.mxu1 }
 0x4f7   : > { %v1630_v0 = vadd.f32 %v2337_v10, %v2053_v52  ;;  %2350 = vmatprep.mubr.msk.bf16.mxu0 %vm630_vm0, %v1673_v6 }
 0x4f8   : > { %v1621_v11 = vpop.f32.mrf.mxu1  ;;  %2351 = vmatmul.mubr.msk.bf16.vlgmr.msra.gmra.mxu0 %vm630_vm0, %v1674_v7 }
 0x4f9   : > { %v1622_v13 = vadd.f32 %v2053_v52, %v1621_v11  ;;  %v1668_v8 = vpack.c.bf16 %v1630_v0, %v1627_v62 }
 0x4fa   : > { %v2340_v9 = vpop.f32.mrf.mxu1 }
 0x4fb   : > { %v1667_v14 = vpack.c.bf16 %v1622_v13, %v1619_v12  ;;  %v1676_v17 = vmax.bf16 %v2551_v19, %v1668_v8  ;;  %v1643_v21 = vadd.f32 %v2340_v9, %v2053_v52 }
 0x4fc   : > { %v1634_v15 = vpop.f32.mrf.mxu1 }
 0x4fd   : > { %v1675_v16 = vmax.bf16 %v2551_v19, %v1667_v14  ;;  %v1635_v23 = vadd.f32 %v2053_v52, %v1634_v15 }
 0x4fe   : > { %v2341_v18 = vpop.f32.mrf.mxu1 }
 0x4ff   : > { %v1646_v20 = vadd.f32 %v2341_v18, %v2053_v52  ;;  %2354 = vmatprep.mubr.msk.bf16.mxu0 %vm630_vm0, %v1675_v16 }
 0x500   : > { %v1637_v22 = vpop.f32.mrf.mxu1  ;;  %2355 = vmatmul.mubr.msk.bf16.gmra.mxu0 %vm630_vm0, %v1676_v17 }
 0x501   : > { %v1638_v24 = vadd.f32 %v2053_v52, %v1637_v22  ;;  %v1670_v25 = vpack.c.bf16 %v1646_v20, %v1643_v21 }
 0x502   : > { %v2344_v26 = vpop.f32.mrf.mxu1 }
 0x503   : > { %v1669_v27 = vpack.c.bf16 %v1638_v24, %v1635_v23  ;;  %v1678_v30 = vmax.bf16 %v2551_v19, %v1670_v25  ;;  %v1659_v33 = vadd.f32 %v2344_v26, %v2053_v52 }
 0x504   : > { %v1650_v28 = vpop.f32.mrf.mxu1 }
 0x505   : > { %v1677_v29 = vmax.bf16 %v2551_v19, %v1669_v27  ;;  %v1651_v35 = vadd.f32 %v2053_v52, %v1650_v28 }
 0x506   : > { %v2345_v31 = vpop.f32.mrf.mxu1 }
 0x507   : > { %v1662_v32 = vadd.f32 %v2345_v31, %v2053_v52  ;;  %2358 = vmatprep.mubr.msk.bf16.mxu0 %vm630_vm0, %v1677_v29 }
 0x508   : > { %v1653_v34 = vpop.f32.mrf.mxu1  ;;  %2359 = vmatmul.mubr.msk.bf16.gmra.mxu0 %vm630_vm0, %v1678_v30 }
 0x509   : > { %v1654_v36 = vadd.f32 %v2053_v52, %v1653_v34  ;;  %v1672_v37 = vpack.c.bf16 %v1662_v32, %v1659_v33 }
 0x50b   : > { %v1671_v39 = vpack.c.bf16 %v1654_v36, %v1651_v35  ;;  %v1680_v42 = vmax.bf16 %v2551_v19, %v1672_v37  ;;  %v1841_v37 = vld [vmem:[%s3041_s15] sm:$0x1] }
 0x50d   : > { %v1679_v41 = vmax.bf16 %v2551_v19, %v1671_v39  ;;  %v1848_v39 = vlaneseq }
 0x50f   : > { %2362 = vmatprep.mubr.msk.bf16.mxu0 %vm630_vm0, %v1679_v41  ;;  %v1849_v41 = vshrl.u32 %v1848_v39, 7 }
 0x510   : > { %2363 = vmatmul.mubr.msk.bf16.gmra.mxu0 %vm630_vm0, %v1680_v42 }
 0x511   : > { %v1850_v42 = vsub.s32 0, %v1849_v41 }
 0x5b8   : > { %v2352_v40 = vpop.f32.mrf.mxu0 }
 0x5b9   : > { %v1771_v47 = vadd.f32 %v2352_v40, %v2066_v45  ;;  %v1851_v40 = vrot.slane %v1846_v44, %v1850_v42 }
 0x5ba   : > { %v1762_v38 = vpop.f32.mrf.mxu0 }
 0x5bb   : > { %v2950_v51 = vadd.f32 %v2066_v45, %v1762_v38 }
 0x5bc   : > { %v2353_v46 = vpop.f32.mrf.mxu0 }
 0x5bd   : > { %v1774_v48 = vadd.f32 %v2353_v46, %v2066_v45 }
 0x5be   : > { %v1765_v49 = vpop.f32.mrf.mxu0 }
 0x5bf   : > { %v1826_v53 = vpack.c.bf16 %v1774_v48, %v1771_v47  ;;  %v1766_v54 = vadd.f32 %v2066_v45, %v1765_v49 }
 0x5c0   : > { %v2356_v55 = vpop.f32.mrf.mxu0 }
 0x5c1   : > { %v1825_v56 = vpack.c.bf16 %v1766_v54, %v2950_v51  ;;  %v1787_v23 = vadd.f32 %v2356_v55, %v2066_v45  ;;  %v1834_v33 = vmax.bf16 %v2551_v19, %v1826_v53 }
 0x5c2   : > { %v1778_v57 = vpop.f32.mrf.mxu0 }
 0x5c3   : > { %v1779_v28 = vadd.f32 %v2066_v45, %v1778_v57  ;;  %v1859_v34 = vsel %vm630_vm0, %v1834_v33, 0  ;;  %v1833_v35 = vmax.bf16 %v2551_v19, %v1825_v56 }
 0x5c4   : > { %v2357_v58 = vpop.f32.mrf.mxu0 }
 0x5c5   : > { %v1790_v21 = vadd.f32 %v2357_v58, %v2066_v45  ;;  %v1856_v36 = vsel %vm630_vm0, %v1833_v35, 0 }
 0x5c6   : > { %v1781_v52 = vpop.f32.mrf.mxu0 }
 0x5c7   : > { %v1828_v24 = vpack.c.bf16 %v1790_v21, %v1787_v23  ;;  %v1782_v27 = vadd.f32 %v2066_v45, %v1781_v52 }
 0x5c8   : > { %v2360_v59 = vpop.f32.mrf.mxu0 }
 0x5c9   : > { %v1803_v8 = vadd.f32 %v2360_v59, %v2066_v45  ;;  %v1836_v26 = vmax.bf16 %v2551_v19, %v1828_v24  ;;  %v1827_v29 = vpack.c.bf16 %v1782_v27, %v1779_v28 }
 0x5ca   : > { %v1794_v50 = vpop.f32.mrf.mxu0 }
 0x5cb   : > { %v1795_v17 = vadd.f32 %v2066_v45, %v1794_v50  ;;  %v1865_v30 = vsel %vm630_vm0, %v1836_v26, 0  ;;  %v1835_v31 = vmax.bf16 %v2551_v19, %v1827_v29 }
 0x5cc   : > { %v2361_v60 = vpop.f32.mrf.mxu0 }
 0x5cd   : > { %v1806_v12 = vadd.f32 %v2361_v60, %v2066_v45  ;;  %v1862_v32 = vsel %vm630_vm0, %v1835_v31, 0 }
 0x5ce   : > { %v1797_v61 = vpop.f32.mrf.mxu0 }
 0x5cf   : > { %v1830_v9 = vpack.c.bf16 %v1806_v12, %v1803_v8  ;;  %v1798_v16 = vadd.f32 %v2066_v45, %v1797_v61 }
 0x5d0   : > { %v2364_v63 = vpop.f32.mrf.mxu0 }
 0x5d1   : > { %v1819_v3 = vadd.f32 %v2364_v63, %v2066_v45  ;;  %v1838_v15 = vmax.bf16 %v2551_v19, %v1830_v9  ;;  %v1829_v18 = vpack.c.bf16 %v1798_v16, %v1795_v17 }
 0x5d2   : > { %v1810_v1 = vpop.f32.mrf.mxu0 }
 0x5d3   : > { %v1811_v10 = vadd.f32 %v2066_v45, %v1810_v1  ;;  %v1871_v20 = vsel %vm630_vm0, %v1838_v15, 0  ;;  %v1837_v22 = vmax.bf16 %v2551_v19, %v1829_v18 }
 0x5d4   : > { %v2365_v2 = vpop.f32.mrf.mxu0 }
 0x5d5   : > { %v1822_v4 = vadd.f32 %v2365_v2, %v2066_v45  ;;  %v1868_v25 = vsel %vm630_vm0, %v1837_v22, 0 }
 0x5d6   : > { %v1813_v5 = vpop.f32.mrf.mxu0 }
 0x5d7   : > { %v1832_v6 = vpack.c.bf16 %v1822_v4, %v1819_v3  ;;  %v1814_v7 = vadd.f32 %v2066_v45, %v1813_v5 }
 0x5d9   : > { %v1840_v0 = vmax.bf16 %v2551_v19, %v1832_v6  ;;  %v1831_v62 = vpack.c.bf16 %v1814_v7, %v1811_v10 }
 0x5db   : > { %v1877_v11 = vsel %vm630_vm0, %v1840_v0, 0  ;;  %v1839_v13 = vmax.bf16 %v2551_v19, %v1831_v62 }
 0x5dc   : > { %2367 = vmatpush3.bf16.xpose.msra.mxu1 %v1877_v11 }
 0x5dd   : > { %2368 = vmatprep.subr.bf16.mxu1 %v2552_v43  ;;  %v1874_v14 = vsel %vm630_vm0, %v1839_v13, 0 }
 0x5e4   : > { %2369 = vmatpush3.bf16.xpose.msra.mxu1 %v1874_v14 }
 0x5e5   : > { %2370 = vmatprep.subr.bf16.mxu1 %v2552_v43 }
 0x5ec   : > { %2371 = vmatpush3.bf16.xpose.msra.mxu1 %v1871_v20 }
 0x5ed   : > { %2372 = vmatprep.subr.bf16.mxu1 %v2552_v43 }
 0x5f4   : > { %2373 = vmatpush3.bf16.xpose.msra.mxu1 %v1868_v25 }
 0x5f5   : > { %2374 = vmatprep.subr.bf16.mxu1 %v2552_v43 }
 0x5fc   : > { %2375 = vmatpush3.bf16.xpose.msra.mxu1 %v1865_v30 }
 0x5fd   : > { %2376 = vmatprep.subr.bf16.mxu1 %v2552_v43 }
 0x604   : > { %2377 = vmatpush3.bf16.xpose.msra.mxu1 %v1862_v32 }
 0x605   : > { %2378 = vmatprep.subr.bf16.mxu1 %v2552_v43 }
 0x60c   : > { %2379 = vmatpush3.bf16.xpose.msra.mxu1 %v1859_v34 }
 0x60d   : > { %2380 = vmatprep.subr.bf16.mxu1 %v2552_v43 }
 0x614   : > { %2381 = vmatpush3.bf16.xpose.msra.mxu1 %v1856_v36 }
 0x61b   : > { %2383 = vmatmul.mubr.msk.bf16.vlgmr.msra.gmra.mxu1 %vm630_vm0, %v1841_v37 }
 0x6db   : > { %v1913_v43 = vpop.f32.mrf.mxu1 }
 0x6dc   : > { %v1914_v19 = vadd.f32 %v1913_v43, %v1851_v40 }
 0x6dd   : > { %v2384_v45 = vpop.f32.mrf.mxu1 }
 0x6de   : > { %1919 = vst [vmem:[%s543_s16] sm:$0x1] %v1914_v19 }
 0x6df   : > { %v1916_v38 = vpop.f32.mrf.mxu1 }
 0x6e0   : > { %2502 = shalt.err (!%p2499_p3)
}
 0x6e1   : > { %s2503_s25 = scalar_lea.hbm %s2985_s18, 16  ;;  %s2507_s16 = scalar_lea.hbm %s3043_s17, 48 }
 0x6e2   : > { %p2504_p4 = scmp.ne.s32.totalorder %s2985_s18, %s2503_s25  ;;  %p2508_p9 = scmp.lt.s32.totalorder %s2985_s18, %s3043_s17 }
 0x6e3   : > { %p2509_p10 = scmp.lt.s32.totalorder %s2507_s16, %s2503_s25 }
 0x6e4   : > { %p2505_p7 = pnand %p2504_p4, %p2683_p5 }
 0x6e5   : > { %p2510_p11 = por %p2509_p10, %p2508_p9 }
 0x6e6   : > { %p2506_p8 = pneg %p2505_p7 }
 0x6e8   : > { %p2511_p12 = pnand %p2510_p11, %p2506_p8 }
 0x6ea   : > { %2514 = shalt.err (!%p2511_p12)
}
 0x6eb   : > { %2402 = dma.vmem_to_hbm [thread:$0]  (%p2683_p5), %s2987_s22, 16, %s2985_s18, %s1921_s28   ;;  %v2385_v46 = vpop.f32.mrf.mxu1 }
 0x6ec PF: > { %s3062_s30 = sld [smem:[#allocation6_spill]]  ;;  %p2408_p13 = scmp.ge.s32.totalorder %s2549_s29, 2 }
 0x6ee   : > { %p2405_p0 = pnand %p2408_p13, %p2687_p6 }
 0x6f0   : > { %p2406_p1 = pneg %p2405_p0 }
 0x6f2   : > { %s1945_s21 = sand.u32 1, %s3062_s30  }
 0x6f3   : > { %s1946_s26 = scalar_lea.sflag [#allocation4], %s1945_s21 }
 0x6f4   : > { %2532 = dma.done.wait (%p2406_p1), %s1946_s26, 16  }
 0x6f5   : > { %2534 = vsyncadd (%p2406_p1), %s1946_s26, 4294967280  ;;  %s3064_s29 = sld [smem:[#allocation8_spill]]  ;;  %s3067_s26 = smov %s2541_s27 }
 0x6f6   : > { %s3065_s25 = sld [smem:[#allocation7_spill]] }
 0x6f7   : > { %s3066_s28 = sld [smem:[#allocation9_spill]] }
 0x6fb   : > { %p29_p2 = scmp.ge.s32.totalorder %s3064_s29, 5  }
 0x6fc   : > { %s3068_s27 = smov %s3065_s25 }
 0x6fd   :  { %31 = sbr.rel (!%p29_p2) target bundleno = 6 (0x6), region = 123 }
 0x702   :  { %1950 = vsyncpa [#allocation4], 1 }
 0x703   :  { %1952 = vsyncpa [#allocation4 + $0x1], 1 }

</bundles_post_ra>
